<compile_context>
chip_gen: v7x
topology: tpu7x:2x2x1
jax: 0.10.0
libtpu: 0.0.40
codegen_flags: <defaults>
</compile_context>

<pallas_src>
import functools

import jax
import jax.numpy as jnp
from jax.experimental import pallas as pl
from jax.experimental.pallas import tpu as pltpu


# --------------------------------------------------------------------------- kernel


def dyn_conv_kernel(col_ref, xc_ref, xh_ref, w_ref, b_ref, o_ref, xwin_ref, *, ks, width):
    """One (sample, flat spatial tile) step of the dynamic convolution.

    col_ref : (1, TILE_L)        int32  output column (n mod W) of each flat position
    xc_ref  : (1, Cin, TILE_L)   cdt    current flat tile of the row-padded image
    xh_ref  : (1, Cin, HALO)     cdt    right halo = first HALO elements of the next tile
    w_ref   : (1, T, Cout, Cin)  cdt    premixed per-sample conv taps (tap-major)
    b_ref   : (1, Cout, 1)       f32    premixed per-sample bias
    o_ref   : (1, Cout, TILE_L)  out
    xwin_ref: (Cin, TILE_L+HALO) cdt    VMEM scratch: contiguous window for the taps
    """
    p = ks // 2
    cout, tile_l = o_ref.shape[1], o_ref.shape[2]

    # Assemble the contiguous window [tile_start, tile_start + TILE_L + HALO) in VMEM;
    # every one of the ks*ks taps is then a cheap shifted slice of it (XLU work only).
    xwin_ref[:, :tile_l] = xc_ref[0]
    xwin_ref[:, tile_l:] = xh_ref[0]

    col = col_ref[...]                                    # (1, TILE_L) int32

    # Left/right image-border validity (the conv's zero width-padding), hoisted per dw.
    valid = {}
    for dw in range(ks):
        if dw < p:
            valid[dw] = col >= (p - dw)
        elif dw > p:
            valid[dw] = col < (width - (dw - p))

    acc = jnp.zeros((cout, tile_l), jnp.float32)
    t = 0
    for dh in range(ks):
        for dw in range(ks):
            off = dh * width + dw                         # static tap offset (>= 0)
            xt = xwin_ref[:, off:off + tile_l]            # (Cin, TILE_L)
            if dw != p:
                xt = jnp.where(valid[dw], xt, jnp.zeros((), xt.dtype))
            # per-tap K=Cin GEMM, f32 accumulation on the MXU
            acc = acc + jnp.dot(w_ref[0, t], xt, preferred_element_type=jnp.float32)
            t += 1
    o_ref[0] = (acc + b_ref[0]).astype(o_ref.dtype)


# ----------------------------------------------------------------------------- glue


def _vmem_budgets():
    """(tile-picker budget, vmem_limit_bytes) derived from the chip's physical VMEM."""
    cap = 64 * 1024 * 1024                     # conservative fallback (v7x per-core VMEM)
    try:
        info = pltpu.get_tpu_info()
        cap = int(getattr(info, "vmem_capacity_bytes", cap) or cap)
    except Exception:
        pass
    budget = max(12 << 20, min(cap // 3, 56 << 20))       # ~21 MiB on v7x, ~42 MiB on v5e/v6e
    limit = max(32 << 20, min(cap * 3 // 4, 112 << 20))   # 48 MiB on v7x, 96 MiB on v5e/v6e
    return budget, limit


def _pick_flat_tile(hw, halo, cin, cout, taps, cdt_size, out_size, batch, budget_bytes):
    """Largest flat spatial tile (a multiple of `halo`, halo itself a 128-multiple) that
    fits the VMEM budget, preferring exact divisors of hw and guaranteeing >= 2 grid steps."""

    def vmem_need(tile):
        blocks = 2 * (cin * tile * cdt_size               # x current tile (double-buffered)
                      + cin * halo * cdt_size             # x halo
                      + tile * 4                          # column ids (int32)
                      + taps * cout * cin * cdt_size      # premixed weights
                      + cout * 4                          # premixed bias
                      + cout * tile * out_size)           # output tile
        live = (cin * (tile + halo) * cdt_size            # xwin scratch
                + 2 * cin * tile * cdt_size               # tap-shift copies in flight
                + cout * tile * 4)                        # f32 accumulator
        return blocks + live + (2 << 20)                  # Mosaic internal-scratch headroom

    cap = pl.cdiv(hw, halo) * halo                        # one tile covering the whole image
    tile = halo
    while tile < cap and tile < 32 * 1024:
        nxt = min(tile * 2, cap)
        if vmem_need(nxt) > budget_bytes:
            break
        tile = nxt
    # Prefer a tile that exactly divides hw -> no output padding, no post-kernel crop copy.
    if hw % tile:
        cand = tile - halo
        while cand >= max(halo, tile // 2):
            if hw % cand == 0:
                tile = cand
                break
            cand -= halo
    # v7x has two TensorCores: make sure there are >= 2 grid steps to shard across them.
    while batch * pl.cdiv(hw, tile) < 2 and tile > halo:
        tile = max(halo, (tile // 2) // halo * halo)
    return tile


def init_params(key, dim, kernel_size, num_kernels, groups=1, reduction=8):
    """Deterministic parameter init mirroring Aggregator.__init__ (dynamic path)."""
    assert dim % groups == 0
    cg = dim // groups
    mid = num_kernels if dim == 3 else dim // reduction
    k0, k1, k2, k3, k4 = jax.random.split(key, 5)

    fan_in = cg * kernel_size * kernel_size
    bound = (6.0 / fan_in) ** 0.5  # kaiming_uniform_
    weight = jax.random.uniform(
        k0, (num_kernels, dim, cg, kernel_size, kernel_size), jnp.float32, -bound, bound)
    # Tap-major copy computed ONCE at init so the per-call path never transposes the bank.
    weight_tm = jnp.transpose(weight, (0, 3, 4, 1, 2)).reshape(
        num_kernels, kernel_size * kernel_size, dim, cg)
    bias = jnp.zeros((num_kernels, dim), jnp.float32)  # torch.zeros(num_kernels, dim)

    # attention branch params: Conv2d(dim, mid, 1) -> GELU -> Conv2d(mid, K, 1) -> Sigmoid
    b1 = 1.0 / (dim ** 0.5)
    aw1 = jax.random.uniform(k1, (dim, mid), jnp.float32, -b1, b1)
    ab1 = jax.random.uniform(k2, (mid,), jnp.float32, -b1, b1)
    b2 = 1.0 / (mid ** 0.5)
    aw2 = jax.random.uniform(k3, (mid, num_kernels), jnp.float32, -b2, b2)
    ab2 = jax.random.uniform(k4, (num_kernels,), jnp.float32, -b2, b2)
    return dict(weight=weight, weight_tm=weight_tm, bias=bias,
                aw1=aw1, ab1=ab1, aw2=aw2, ab2=ab2)


def _attention(x_nchw, params):
    # AdaptiveAvgPool2d(1) + 1x1 Conv + exact GELU + 1x1 Conv + Sigmoid (tiny; plain-JAX glue)
    pooled = jnp.mean(x_nchw, axis=(2, 3))                                   # (B, C)
    h = jax.nn.gelu(pooled @ params["aw1"] + params["ab1"], approximate=False)
    return jax.nn.sigmoid(h @ params["aw2"] + params["ab2"])                 # (B, K)


@functools.partial(jax.jit, static_argnames=("kernel_size", "groups", "compute_dtype", "out_dtype"))
def aggregator_forward(x, params, *, kernel_size, groups=1,
                       compute_dtype=jnp.bfloat16, out_dtype=None):
    """Aggregator.forward (dynamic path).  x: NCHW, returns NCHW (out_dtype or x.dtype)."""
    # TODO(synk): grouped dynamic conv (groups > 1), bias=False, and the static
    # num_kernels == 1 branch (a plain Conv2d) are not implemented here.
    assert groups == 1
    ks = kernel_size
    assert ks % 2 == 1, "kernel_size must be odd (module uses padding=kernel_size//2)"
    B, C, H, W = x.shape
    K, T, Cout, Cin = params["weight_tm"].shape
    assert (T, Cout, Cin) == (ks * ks, C, C)
    p = ks // 2
    HW = H * W
    out_dtype = x.dtype if out_dtype is None else out_dtype
    cdt = jnp.dtype(compute_dtype)

    # --- attention + per-sample weight/bias mixing: tiny (B,K)@(K,*) matmuls, left in XLA ---
    attn = _attention(x, params)                                              # (B, K)
    w_mixed = (attn @ params["weight_tm"].reshape(K, T * C * C)
               ).reshape(B, T, C, C).astype(cdt)                              # (B, T, Cout, Cin)
    b_mixed = (attn @ params["bias"]).reshape(B, C, 1)                        # (B, Cout, 1) f32

    # --- flat-spatial tiling: lanes carry H*W, the ks*ks taps are built in-kernel ---
    halo = max(128, pl.cdiv((ks - 1) * (W + 1), 128) * 128)   # right halo, lane aligned
    budget, vmem_limit = _vmem_budgets()
    tile_l = _pick_flat_tile(HW, halo, C, C, T, cdt.itemsize,
                             jnp.dtype(out_dtype).itemsize, B, budget)
    ratio = tile_l // halo
    n_tiles = pl.cdiv(HW, tile_l)
    padded_hw = n_tiles * tile_l
    l_pad = padded_hw + halo

    # Row-padded image, flattened row-major, with `p` leading zeros so every tap offset
    # dh*W + dw is non-negative.  Cast to the compute dtype BEFORE padding so HBM holds
    # exactly one (bf16) copy of x — no im2col blow-up, no second padding pass.
    xpad = jnp.pad(x.astype(cdt), ((0, 0), (0, 0), (p, p), (0, 0)))           # (B, C, H+2p, W)
    x_flat = xpad.reshape(B, C, (H + 2 * p) * W)
    x_flat = jnp.pad(x_flat, ((0, 0), (0, 0), (p, l_pad - p - (H + 2 * p) * W)))

    # Output-column index of every flat output position (avoids an in-kernel integer mod).
    col_ids = (jnp.arange(padded_hw, dtype=jnp.int32) % W).reshape(1, padded_hw)

    kernel = functools.partial(dyn_conv_kernel, ks=ks, width=W)

    # TODO(synk): on v5e add pipeline_mode=pl.Buffered(3) to the x stream; on v7x an
    # optional fp8 (float8_e4m3) compute path for x/w would halve the dominant stream.
    out_flat = pl.pallas_call(
        kernel,
        out_shape=jax.ShapeDtypeStruct((B, C, padded_hw), out_dtype),
        grid=(B, n_tiles),
        in_specs=[
            pl.BlockSpec((1, tile_l), lambda b, s: (0, s)),                    # column ids
            pl.BlockSpec((1, C, tile_l), lambda b, s: (b, 0, s)),              # x, current tile
            pl.BlockSpec((1, C, halo), lambda b, s: (b, 0, (s + 1) * ratio)),  # x, right halo
            pl.BlockSpec((1, T, C, C), lambda b, s: (b, 0, 0, 0)),             # premixed weight
            pl.BlockSpec((1, C, 1), lambda b, s: (b, 0, 0)),                   # premixed bias
        ],
        out_specs=pl.BlockSpec((1, C, tile_l), lambda b, s: (b, 0, s)),
        scratch_shapes=[pltpu.VMEM((C, tile_l + halo), cdt)],                  # tap window
        compiler_params=pltpu.CompilerParams(
            dimension_semantics=("parallel", "parallel"),
            vmem_limit_bytes=vmem_limit,
        ),
    )(col_ids, x_flat, x_flat, w_mixed, b_mixed)

    out = out_flat if padded_hw == HW else out_flat[:, :, :HW]
    return out.reshape(B, C, H, W)


def reference_forward(x, params):
    """Pure-JAX reference (mirrors the PyTorch forward with F.conv2d, groups=B)."""
    B, C, H, W = x.shape
    attn = _attention(x, params)                                             # (B, K)
    outs = []
    for b in range(B):
        w_b = jnp.einsum("k,koihw->oihw", attn[b], params["weight"])
        bias_b = attn[b] @ params["bias"]                                    # (C,)
        o = jax.lax.conv_general_dilated(
            x[b:b + 1], w_b, window_strides=(1, 1), padding="SAME",
            dimension_numbers=("NCHW", "OIHW", "NCHW"))
        outs.append(o[0] + bias_b[:, None, None])
    return jnp.stack(outs)


if __name__ == "__main__":
    key = jax.random.PRNGKey(0)
    B, dim, H, W = 2, 16, 16, 16
    kernel_size, num_kernels, groups, reduction = 3, 2, 1, 8

    params = init_params(key, dim, kernel_size, num_kernels, groups, reduction)
    x = jax.random.normal(jax.random.fold_in(key, 99), (B, dim, H, W), jnp.float32)

    ref = reference_forward(x, params)

    # f32 compute path: tight check of the kernel / halo / masking / mixing logic.
    out_f32 = aggregator_forward(x, params, kernel_size=kernel_size, groups=groups,
                                 compute_dtype=jnp.float32)
    out_f32 = jax.block_until_ready(out_f32)
    assert out_f32.shape == (B, dim, H, W), out_f32.shape
    if not jnp.allclose(out_f32, ref, atol=1e-3, rtol=1e-3):
        raise AssertionError(
            f"f32 mismatch vs reference, max abs err = "
            f"{float(jnp.max(jnp.abs(out_f32 - ref)))}")

    # bf16 compute path (default / fast): f32 accumulation, looser tolerance for bf16 inputs.
    out_bf16 = aggregator_forward(x, params, kernel_size=kernel_size, groups=groups)
    out_bf16 = jax.block_until_ready(out_bf16)
    assert out_bf16.shape == (B, dim, H, W), out_bf16.shape
    if not jnp.allclose(out_bf16, ref, atol=5e-2, rtol=5e-2):
        raise AssertionError(
            f"bf16 mismatch vs reference, max abs err = "
            f"{float(jnp.max(jnp.abs(out_bf16 - ref)))}")

    print("KERNEL_OK")
</pallas_src>

<mosaic_0001>
module attributes {stable_mosaic.version = 11 : i64} {
  func.func @dyn_conv_kernel(%arg0: i32, %arg1: i32, %arg2: memref<1x256xi32, #tpu.memory_space<vmem>>, %arg3: memref<1x16x256xf32, #tpu.memory_space<vmem>>, %arg4: memref<1x16x128xf32, #tpu.memory_space<vmem>>, %arg5: memref<1x9x16x16xf32, #tpu.memory_space<vmem>>, %arg6: memref<1x16x1xf32, #tpu.memory_space<vmem>>, %arg7: memref<1x16x256xf32, #tpu.memory_space<vmem>>, %arg8: memref<16x384xf32, #tpu.memory_space<vmem>>) attributes {dimension_semantics = [#tpu.dimension_semantics<parallel>, #tpu.dimension_semantics<parallel>], iteration_bounds = array<i64: 2, 1>, scalar_prefetch = 0 : i64, scratch_operands = 1 : i64, tpu.core_type = #tpu.core_type<tc>, window_params = [{transform_indices = @transform_0, window_bounds = array<i64: 1, 256>}, {transform_indices = @transform_1, window_bounds = array<i64: 1, 16, 256>}, {transform_indices = @transform_2, window_bounds = array<i64: 1, 16, 128>}, {transform_indices = @transform_3, window_bounds = array<i64: 1, 9, 16, 16>}, {transform_indices = @transform_4, window_bounds = array<i64: 1, 16, 1>}, {transform_indices = @transform_5, window_bounds = array<i64: 1, 16, 256>}]} {
    %c0 = arith.constant 0 : index
    %c0_0 = arith.constant 0 : index
    %c0_1 = arith.constant 0 : index
    %0 = vector.load %arg3[%c0, %c0_0, %c0_1] : memref<1x16x256xf32, #tpu.memory_space<vmem>>, vector<1x16x256xf32>
    %1 = vector.shape_cast %0 : vector<1x16x256xf32> to vector<16x256xf32>
    %c0_2 = arith.constant 0 : index
    %c0_3 = arith.constant 0 : index
    %2 = vector.load %arg8[%c0_2, %c0_3] : memref<16x384xf32, #tpu.memory_space<vmem>>, vector<16x256xf32>
    tpu.vector_store %arg8[%c0_2, %c0_3], %1 {strides = array<i32>} : memref<16x384xf32, #tpu.memory_space<vmem>>, vector<16x256xf32>,
    %c0_4 = arith.constant 0 : index
    %c0_5 = arith.constant 0 : index
    %c0_6 = arith.constant 0 : index
    %3 = vector.load %arg4[%c0_4, %c0_5, %c0_6] : memref<1x16x128xf32, #tpu.memory_space<vmem>>, vector<1x16x128xf32>
    %4 = vector.shape_cast %3 : vector<1x16x128xf32> to vector<16x128xf32>
    %c0_7 = arith.constant 0 : index
    %c256 = arith.constant 256 : index
    %5 = vector.load %arg8[%c0_7, %c256] : memref<16x384xf32, #tpu.memory_space<vmem>>, vector<16x128xf32>
    tpu.vector_store %arg8[%c0_7, %c256], %4 {strides = array<i32>} : memref<16x384xf32, #tpu.memory_space<vmem>>, vector<16x128xf32>,
    %c0_8 = arith.constant 0 : index
    %c0_9 = arith.constant 0 : index
    %6 = vector.load %arg2[%c0_8, %c0_9] : memref<1x256xi32, #tpu.memory_space<vmem>>, vector<1x256xi32>
    %c1_i32 = arith.constant 1 : i32
    %7 = vector.broadcast %c1_i32 : i32 to vector<1x256xi32>
    %8 = arith.cmpi sge, %6, %7 : vector<1x256xi32>
    %c15_i32 = arith.constant 15 : i32
    %9 = vector.broadcast %c15_i32 : i32 to vector<1x256xi32>
    %10 = arith.cmpi slt, %6, %9 : vector<1x256xi32>
    %cst = arith.constant 0.000000e+00 : f32
    %11 = vector.broadcast %cst : f32 to vector<16x256xf32>
    %c0_10 = arith.constant 0 : index
    %c0_11 = arith.constant 0 : index
    %12 = vector.load %arg8[%c0_10, %c0_11] : memref<16x384xf32, #tpu.memory_space<vmem>>, vector<16x256xf32>
    %cst_12 = arith.constant 0.000000e+00 : f32
    %13 = vector.shape_cast %8 : vector<1x256xi1> to vector<1x256xi1>
    %14 = vector.broadcast %13 : vector<1x256xi1> to vector<16x256xi1>
    %15 = vector.broadcast %cst_12 : f32 to vector<16x256xf32>
    %16 = arith.select %14, %12, %15 : vector<16x256xi1>, vector<16x256xf32>
    %c0_13 = arith.constant 0 : index
    %c0_14 = arith.constant 0 : index
    %c0_15 = arith.constant 0 : index
    %c0_16 = arith.constant 0 : index
    %17 = vector.load %arg5[%c0_13, %c0_14, %c0_15, %c0_16] : memref<1x9x16x16xf32, #tpu.memory_space<vmem>>, vector<1x1x16x16xf32>
    %18 = vector.shape_cast %17 : vector<1x1x16x16xf32> to vector<16x16xf32>
    %cst_17 = arith.constant dense<0.000000e+00> : vector<16x256xf32>
    %19 = tpu.matmul %18, %16, %cst_17 {dimension_numbers = #tpu.dot_dimension_numbers<[1], [0], [0], [1], [0, 0, 1, 1], [], []>} : vector<16x16xf32>, vector<16x256xf32>, vector<16x256xf32> -> vector<16x256xf32>
    %20 = arith.addf %11, %19 : vector<16x256xf32>
    %c0_18 = arith.constant 0 : index
    %c1 = arith.constant 1 : index
    %21 = vector.load %arg8[%c0_18, %c1] : memref<16x384xf32, #tpu.memory_space<vmem>>, vector<16x256xf32>
    %c0_19 = arith.constant 0 : index
    %c1_20 = arith.constant 1 : index
    %c0_21 = arith.constant 0 : index
    %c0_22 = arith.constant 0 : index
    %22 = vector.load %arg5[%c0_19, %c1_20, %c0_21, %c0_22] : memref<1x9x16x16xf32, #tpu.memory_space<vmem>>, vector<1x1x16x16xf32>
    %23 = vector.shape_cast %22 : vector<1x1x16x16xf32> to vector<16x16xf32>
    %cst_23 = arith.constant dense<0.000000e+00> : vector<16x256xf32>
    %24 = tpu.matmul %23, %21, %cst_23 {dimension_numbers = #tpu.dot_dimension_numbers<[1], [0], [0], [1], [0, 0, 1, 1], [], []>} : vector<16x16xf32>, vector<16x256xf32>, vector<16x256xf32> -> vector<16x256xf32>
    %25 = arith.addf %20, %24 : vector<16x256xf32>
    %c0_24 = arith.constant 0 : index
    %c2 = arith.constant 2 : index
    %26 = vector.load %arg8[%c0_24, %c2] : memref<16x384xf32, #tpu.memory_space<vmem>>, vector<16x256xf32>
    %cst_25 = arith.constant 0.000000e+00 : f32
    %27 = vector.shape_cast %10 : vector<1x256xi1> to vector<1x256xi1>
    %28 = vector.broadcast %27 : vector<1x256xi1> to vector<16x256xi1>
    %29 = vector.broadcast %cst_25 : f32 to vector<16x256xf32>
    %30 = arith.select %28, %26, %29 : vector<16x256xi1>, vector<16x256xf32>
    %c0_26 = arith.constant 0 : index
    %c2_27 = arith.constant 2 : index
    %c0_28 = arith.constant 0 : index
    %c0_29 = arith.constant 0 : index
    %31 = vector.load %arg5[%c0_26, %c2_27, %c0_28, %c0_29] : memref<1x9x16x16xf32, #tpu.memory_space<vmem>>, vector<1x1x16x16xf32>
    %32 = vector.shape_cast %31 : vector<1x1x16x16xf32> to vector<16x16xf32>
    %cst_30 = arith.constant dense<0.000000e+00> : vector<16x256xf32>
    %33 = tpu.matmul %32, %30, %cst_30 {dimension_numbers = #tpu.dot_dimension_numbers<[1], [0], [0], [1], [0, 0, 1, 1], [], []>} : vector<16x16xf32>, vector<16x256xf32>, vector<16x256xf32> -> vector<16x256xf32>
    %34 = arith.addf %25, %33 : vector<16x256xf32>
    %c0_31 = arith.constant 0 : index
    %c16 = arith.constant 16 : index
    %35 = vector.load %arg8[%c0_31, %c16] : memref<16x384xf32, #tpu.memory_space<vmem>>, vector<16x256xf32>
    %cst_32 = arith.constant 0.000000e+00 : f32
    %36 = vector.shape_cast %8 : vector<1x256xi1> to vector<1x256xi1>
    %37 = vector.broadcast %36 : vector<1x256xi1> to vector<16x256xi1>
    %38 = vector.broadcast %cst_32 : f32 to vector<16x256xf32>
    %39 = arith.select %37, %35, %38 : vector<16x256xi1>, vector<16x256xf32>
    %c0_33 = arith.constant 0 : index
    %c3 = arith.constant 3 : index
    %c0_34 = arith.constant 0 : index
    %c0_35 = arith.constant 0 : index
    %40 = vector.load %arg5[%c0_33, %c3, %c0_34, %c0_35] : memref<1x9x16x16xf32, #tpu.memory_space<vmem>>, vector<1x1x16x16xf32>
    %41 = vector.shape_cast %40 : vector<1x1x16x16xf32> to vector<16x16xf32>
    %cst_36 = arith.constant dense<0.000000e+00> : vector<16x256xf32>
    %42 = tpu.matmul %41, %39, %cst_36 {dimension_numbers = #tpu.dot_dimension_numbers<[1], [0], [0], [1], [0, 0, 1, 1], [], []>} : vector<16x16xf32>, vector<16x256xf32>, vector<16x256xf32> -> vector<16x256xf32>
    %43 = arith.addf %34, %42 : vector<16x256xf32>
    %c0_37 = arith.constant 0 : index
    %c17 = arith.constant 17 : index
    %44 = vector.load %arg8[%c0_37, %c17] : memref<16x384xf32, #tpu.memory_space<vmem>>, vector<16x256xf32>
    %c0_38 = arith.constant 0 : index
    %c4 = arith.constant 4 : index
    %c0_39 = arith.constant 0 : index
    %c0_40 = arith.constant 0 : index
    %45 = vector.load %arg5[%c0_38, %c4, %c0_39, %c0_40] : memref<1x9x16x16xf32, #tpu.memory_space<vmem>>, vector<1x1x16x16xf32>
    %46 = vector.shape_cast %45 : vector<1x1x16x16xf32> to vector<16x16xf32>
    %cst_41 = arith.constant dense<0.000000e+00> : vector<16x256xf32>
    %47 = tpu.matmul %46, %44, %cst_41 {dimension_numbers = #tpu.dot_dimension_numbers<[1], [0], [0], [1], [0, 0, 1, 1], [], []>} : vector<16x16xf32>, vector<16x256xf32>, vector<16x256xf32> -> vector<16x256xf32>
    %48 = arith.addf %43, %47 : vector<16x256xf32>
    %c0_42 = arith.constant 0 : index
    %c18 = arith.constant 18 : index
    %49 = vector.load %arg8[%c0_42, %c18] : memref<16x384xf32, #tpu.memory_space<vmem>>, vector<16x256xf32>
    %cst_43 = arith.constant 0.000000e+00 : f32
    %50 = vector.shape_cast %10 : vector<1x256xi1> to vector<1x256xi1>
    %51 = vector.broadcast %50 : vector<1x256xi1> to vector<16x256xi1>
    %52 = vector.broadcast %cst_43 : f32 to vector<16x256xf32>
    %53 = arith.select %51, %49, %52 : vector<16x256xi1>, vector<16x256xf32>
    %c0_44 = arith.constant 0 : index
    %c5 = arith.constant 5 : index
    %c0_45 = arith.constant 0 : index
    %c0_46 = arith.constant 0 : index
    %54 = vector.load %arg5[%c0_44, %c5, %c0_45, %c0_46] : memref<1x9x16x16xf32, #tpu.memory_space<vmem>>, vector<1x1x16x16xf32>
    %55 = vector.shape_cast %54 : vector<1x1x16x16xf32> to vector<16x16xf32>
    %cst_47 = arith.constant dense<0.000000e+00> : vector<16x256xf32>
    %56 = tpu.matmul %55, %53, %cst_47 {dimension_numbers = #tpu.dot_dimension_numbers<[1], [0], [0], [1], [0, 0, 1, 1], [], []>} : vector<16x16xf32>, vector<16x256xf32>, vector<16x256xf32> -> vector<16x256xf32>
    %57 = arith.addf %48, %56 : vector<16x256xf32>
    %c0_48 = arith.constant 0 : index
    %c32 = arith.constant 32 : index
    %58 = vector.load %arg8[%c0_48, %c32] : memref<16x384xf32, #tpu.memory_space<vmem>>, vector<16x256xf32>
    %cst_49 = arith.constant 0.000000e+00 : f32
    %59 = vector.shape_cast %8 : vector<1x256xi1> to vector<1x256xi1>
    %60 = vector.broadcast %59 : vector<1x256xi1> to vector<16x256xi1>
    %61 = vector.broadcast %cst_49 : f32 to vector<16x256xf32>
    %62 = arith.select %60, %58, %61 : vector<16x256xi1>, vector<16x256xf32>
    %c0_50 = arith.constant 0 : index
    %c6 = arith.constant 6 : index
    %c0_51 = arith.constant 0 : index
    %c0_52 = arith.constant 0 : index
    %63 = vector.load %arg5[%c0_50, %c6, %c0_51, %c0_52] : memref<1x9x16x16xf32, #tpu.memory_space<vmem>>, vector<1x1x16x16xf32>
    %64 = vector.shape_cast %63 : vector<1x1x16x16xf32> to vector<16x16xf32>
    %cst_53 = arith.constant dense<0.000000e+00> : vector<16x256xf32>
    %65 = tpu.matmul %64, %62, %cst_53 {dimension_numbers = #tpu.dot_dimension_numbers<[1], [0], [0], [1], [0, 0, 1, 1], [], []>} : vector<16x16xf32>, vector<16x256xf32>, vector<16x256xf32> -> vector<16x256xf32>
    %66 = arith.addf %57, %65 : vector<16x256xf32>
    %c0_54 = arith.constant 0 : index
    %c33 = arith.constant 33 : index
    %67 = vector.load %arg8[%c0_54, %c33] : memref<16x384xf32, #tpu.memory_space<vmem>>, vector<16x256xf32>
    %c0_55 = arith.constant 0 : index
    %c7 = arith.constant 7 : index
    %c0_56 = arith.constant 0 : index
    %c0_57 = arith.constant 0 : index
    %68 = vector.load %arg5[%c0_55, %c7, %c0_56, %c0_57] : memref<1x9x16x16xf32, #tpu.memory_space<vmem>>, vector<1x1x16x16xf32>
    %69 = vector.shape_cast %68 : vector<1x1x16x16xf32> to vector<16x16xf32>
    %cst_58 = arith.constant dense<0.000000e+00> : vector<16x256xf32>
    %70 = tpu.matmul %69, %67, %cst_58 {dimension_numbers = #tpu.dot_dimension_numbers<[1], [0], [0], [1], [0, 0, 1, 1], [], []>} : vector<16x16xf32>, vector<16x256xf32>, vector<16x256xf32> -> vector<16x256xf32>
    %71 = arith.addf %66, %70 : vector<16x256xf32>
    %c0_59 = arith.constant 0 : index
    %c34 = arith.constant 34 : index
    %72 = vector.load %arg8[%c0_59, %c34] : memref<16x384xf32, #tpu.memory_space<vmem>>, vector<16x256xf32>
    %cst_60 = arith.constant 0.000000e+00 : f32
    %73 = vector.shape_cast %10 : vector<1x256xi1> to vector<1x256xi1>
    %74 = vector.broadcast %73 : vector<1x256xi1> to vector<16x256xi1>
    %75 = vector.broadcast %cst_60 : f32 to vector<16x256xf32>
    %76 = arith.select %74, %72, %75 : vector<16x256xi1>, vector<16x256xf32>
    %c0_61 = arith.constant 0 : index
    %c8 = arith.constant 8 : index
    %c0_62 = arith.constant 0 : index
    %c0_63 = arith.constant 0 : index
    %77 = vector.load %arg5[%c0_61, %c8, %c0_62, %c0_63] : memref<1x9x16x16xf32, #tpu.memory_space<vmem>>, vector<1x1x16x16xf32>
    %78 = vector.shape_cast %77 : vector<1x1x16x16xf32> to vector<16x16xf32>
    %cst_64 = arith.constant dense<0.000000e+00> : vector<16x256xf32>
    %79 = tpu.matmul %78, %76, %cst_64 {dimension_numbers = #tpu.dot_dimension_numbers<[1], [0], [0], [1], [0, 0, 1, 1], [], []>} : vector<16x16xf32>, vector<16x256xf32>, vector<16x256xf32> -> vector<16x256xf32>
    %80 = arith.addf %71, %79 : vector<16x256xf32>
    %c0_65 = arith.constant 0 : index
    %c0_66 = arith.constant 0 : index
    %c0_67 = arith.constant 0 : index
    %81 = vector.load %arg6[%c0_65, %c0_66, %c0_67] : memref<1x16x1xf32, #tpu.memory_space<vmem>>, vector<1x16x1xf32>
    %82 = vector.shape_cast %81 : vector<1x16x1xf32> to vector<16x1xf32>
    %83 = vector.broadcast %82 : vector<16x1xf32> to vector<16x256xf32>
    %84 = arith.addf %80, %83 : vector<16x256xf32>
    %c0_68 = arith.constant 0 : index
    %c0_69 = arith.constant 0 : index
    %c0_70 = arith.constant 0 : index
    %85 = vector.load %arg7[%c0_68, %c0_69, %c0_70] : memref<1x16x256xf32, #tpu.memory_space<vmem>>, vector<1x16x256xf32>
    %86 = vector.shape_cast %85 : vector<1x16x256xf32> to vector<16x256xf32>
    %87 = vector.shape_cast %84 : vector<16x256xf32> to vector<1x16x256xf32>
    tpu.vector_store %arg7[%c0_68, %c0_69, %c0_70], %87 {strides = array<i32>} : memref<1x16x256xf32, #tpu.memory_space<vmem>>, vector<1x16x256xf32>,
    return
  }
  func.func @transform_0(%arg0: i32, %arg1: i32) -> (i32, i32) {
    %c0_i32 = arith.constant 0 : i32
    %c0_i32_0 = arith.constant 0 : i32
    return %c0_i32, %arg1 : i32, i32
  }
  func.func @transform_1(%arg0: i32, %arg1: i32) -> (i32, i32, i32) {
    %c0_i32 = arith.constant 0 : i32
    %c0_i32_0 = arith.constant 0 : i32
    return %arg0, %c0_i32, %arg1 : i32, i32, i32
  }
  func.func @transform_2(%arg0: i32, %arg1: i32) -> (i32, i32, i32) {
    %c1_i32 = arith.constant 1 : i32
    %0 = arith.addi %arg1, %c1_i32 : i32
    %c2_i32 = arith.constant 2 : i32
    %1 = arith.muli %0, %c2_i32 : i32
    %c0_i32 = arith.constant 0 : i32
    %c0_i32_0 = arith.constant 0 : i32
    return %arg0, %c0_i32, %1 : i32, i32, i32
  }
  func.func @transform_3(%arg0: i32, %arg1: i32) -> (i32, i32, i32, i32) {
    %c0_i32 = arith.constant 0 : i32
    %c0_i32_0 = arith.constant 0 : i32
    %c0_i32_1 = arith.constant 0 : i32
    %c0_i32_2 = arith.constant 0 : i32
    return %arg0, %c0_i32, %c0_i32_0, %c0_i32_1 : i32, i32, i32, i32
  }
  func.func @transform_4(%arg0: i32, %arg1: i32) -> (i32, i32, i32) {
    %c0_i32 = arith.constant 0 : i32
    %c0_i32_0 = arith.constant 0 : i32
    %c0_i32_1 = arith.constant 0 : i32
    return %arg0, %c0_i32, %c0_i32_0 : i32, i32, i32
  }
  func.func @transform_5(%arg0: i32, %arg1: i32) -> (i32, i32, i32) {
    %c0_i32 = arith.constant 0 : i32
    %c0_i32_0 = arith.constant 0 : i32
    return %arg0, %c0_i32, %arg1 : i32, i32, i32
  }
}

</mosaic_0001>

<bundles_post_ra>
// kernel: aggregator_forward.1
= control target key start
LH: loop header
LB: loop body
LE: loop exit
PB: predicated region body
PF: predicated region fallthrough
CT: control target
= control target key end

     0   :  { %s2591_s18 = smov 0   ;;  %s2593_s19 = smov 0   ;;  %s2846_s0 = inlined_call_operand.vmem [shape: s32[1,256], index: 0, kind: input, shape index: {}]   ;;  %s2847_s1 = inlined_call_operand.vmem [shape: f32[2,16,384], index: 1, kind: input, shape index: {}, may-alias: {1,2}]   ;;  %s2848_s2 = inlined_call_operand.vmem [shape: f32[2,16,384], index: 2, kind: input, shape index: {}, may-alias: {1,2}]   ;;  %s2849_s3 = inlined_call_operand.vmem [shape: f32[2,9,16,16], index: 3, kind: input, shape index: {}]   ;;  %s2850_s4 = inlined_call_operand.vmem [shape: f32[2,16,1], index: 4, kind: input, shape index: {}]   ;;  %s2851_s5 = inlined_call_operand.vmem [shape: f32[2,16,256], index: 5, kind: output, shape index: {}]  }
   0x1   :  { %s2595_s20 = smov 0   ;;  %s2597_s21 = smov 0  }
   0x2   :  { %s2599_s22 = smov 0  }
   0x3 LB: > { %s27_s23 = sadd.s32 1, %s2529_s21  ;;  %p69_p1 = scmp.ne.s32.totalorder %s2521_s19, %s2517_s18  ;;  %s2533_s22 = sphi %s2599_s22, %s15_s22   ;;  %s2529_s21 = sphi %s2597_s21, %s2864_s21   ;;  %s2525_s20 = sphi %s2595_s20, %s2863_s20   ;;  %s2521_s19 = sphi %s2593_s19, %s2862_s19   ;;  %s2517_s18 = sphi %s2591_s18, %s2861_s18  }
   0x4   : > { %p29_p0 = scmp.ge.s32.totalorder %s27_s23, 2  ;;  %p70_p2 = scmp.eq.s32.totalorder %s2533_s22, 0 }
   0x5   : > { %s62_s26 = sadd.s32 1, %s2521_s19  ;;  %p2104_p5 = scmp.ge.s32.totalorder %s2533_s22, 2 }
   0x6   : > { %s2866_s23 = smov (%p29_p0, %s27_s23), 0  ;;  %p2622_p3 = por %p70_p2, %p69_p1 }
   0x7   : > { %s57_s25 = ssub.s32 %s2529_s21, %s2866_s23  ;;  %215 = sbr.rel (%p2104_p5) target bundleno = 38 (0x26), region = 20 }
   0x8   : > { %p60_p4 = scmp.eq.s32.totalorder %s57_s25, 0 }
   0xa   : > { %s2630_s27 = scalar_select %p60_p4, %s2521_s19, %s62_s26  }
   0xe   : > { %218 = sbr.rel (!%p2622_p3) target bundleno = 31 (0x1f), region = 24  ;;  %s220_s28 = sand.u32 (%p2622_p3), 1, %s2521_s19  }
   0xf   : > { %s2273_s29 = smul.u32 (%p2622_p3), 48, %s2529_s21  ;;  %s2105_s30 = sshll.u32 (%p2622_p3), %s220_s28, 5 }
  0x10   : > { %s222_s9 = scalar_lea.vmem (%p2622_p3), [#allocation3], %s2105_s30   ;;  %s2543_s12 = smov (%p2622_p3), 0  }
  0x11   : > { %s232_s8 = scalar_lea.vmem (%p2622_p3), %s2847_s1, %s2273_s29   ;;  %s2535_s10 = smov (%p2622_p3), %s222_s9  }
  0x12   : > { %s2539_s11 = smov (%p2622_p3), %s232_s8   ;;  %s2547_s13 = smov (%p2622_p3), 0  }
  0x15 LB: >> { %v430_v0 = vld [vmem:[%s2541_s11] sm:$0xff]  ;;  %v432_v1 = vld [vmem:[%s2541_s11 + $0x18] sm:$0xff]  ;;  %s434_s14 = sadd.s32 1, %s2545_s12  ;;  %s424_s13 = sadd.s32 1, %s2549_s13   ;;  %s2549_s13 = sphi %s2547_s13, %s424_s13   ;;  %s2545_s12 = sphi %s2543_s12, %s2544_s12   ;;  %s2541_s11 = sphi %s2539_s11, %s439_s11   ;;  %s2537_s10 = sphi %s2535_s10, %s440_s10  }
  0x16   : >> { %431 = vst [vmem:[%s2537_s10] sm:$0xff] %v430_v0  ;;  %433 = vst [vmem:[%s2537_s10 + $0x10] sm:$0xff] %v432_v1  ;;  %p435_p6 = scmp.ge.s32.totalorder %s434_s14, 2  ;;  %p423_p7 = scmp.ge.s32.totalorder %s424_s13, 2 }
  0x18   : >> { %s2868_s14 = smov (%p435_p6, %s434_s14), 0  ;;  %426 = sbr.rel (!%p423_p7) target bundleno = 21 (0x15), region = 233 }
  0x19   : >> { %s2109_s15 = sshll.u32 %s2868_s14, 3  ;;  %s2544_s12 = smov %s2868_s14  }
  0x1a   : >> { %s439_s11 = scalar_lea.vmem %s232_s8, %s2109_s15   ;;  %s440_s10 = scalar_lea.vmem %s222_s9, %s2109_s15 [#allocation3]  }
  0x1f PF: > { %644 = sbr.rel (!%p2622_p3) target bundleno = 38 (0x26), region = 90  ;;  %s646_s16 = sand.u32 (%p2622_p3), 1, %s2521_s19  }
  0x20   : > { %s2118_s17 = smul.u32 (%p2622_p3), 48, %s2529_s21  ;;  %s2117_s25 = sshll.u32 (%p2622_p3), %s646_s16, 4 }
  0x21   : > { %s648_s30 = scalar_lea.vmem (%p2622_p3), [#allocation4], %s2117_s25 }
  0x22   : > { %s1936_s29 = scalar_lea.vmem (%p2622_p3), %s2848_s2, %s2118_s17 }
  0x23   : > { %v2119_v2 = vld [vmem:[%s1936_s29 + $0x10] sm:$0xff] (%p2622_p3)  ;;  %v2120_v3 = vld [vmem:[%s1936_s29 + $0x28] sm:$0xff] (%p2622_p3) }
  0x24   : > { %685 = vst [vmem:[%s648_s30] sm:$0xff] (%p2622_p3), %v2119_v2  ;;  %687 = vst [vmem:[%s648_s30 + $0x8] sm:$0xff] (%p2622_p3), %v2120_v3 }
  0x26 PF: > { %p2121_p8 = scmp.ge.s32.totalorder %s2533_s22, 1  ;;  %p708_p9 = scmp.lt.s32.totalorder %s2533_s22, 3 }
  0x28   : > { %p709_p10 = pnand %p2121_p8, %p708_p9 }
  0x29   : > { %s715_s24 = sand.u32 (!%p709_p10), 1, %s2517_s18   ;;  %s2551_s10 = smov (!%p709_p10), 111   ;;  %v2553_v13 = vmov (!%p709_p10), 0   ;;  %v2554_v14 = vmov (!%p709_p10), 0.0   ;;  %v823_v19 = vlaneseq (!%p709_p10)  ;;  %v815_v20 = vld [vmem:[%s2846_s0] sm:$0x3] (!%p709_p10) }
  0x2a   : > { %712 = sbr.rel (%p709_p10) target bundleno = 441 (0x1b9), region = 136  ;;  %s2122_s6 = sshll.u32 (!%p709_p10), %s715_s24, 5  ;;  %2477 = vset.pattern.permute.xlu0 (!%p709_p10), %v2553_v13  ;;  %2478 = vset.pattern.permute.xlu1 (!%p709_p10), %v2553_v13  ;;  %vm816_vm0 = vcmp.ge.s32.totalorder (!%p709_p10), %v815_v20, 1  ;;  %vm1298_vm1 = vcmask (!%p709_p10), 908288   ;;  %vm817_vm2 = vcmp.lt.s32.totalorder (!%p709_p10), %v815_v20, 15  ;;  %vm866_vm3 = vcmask (!%p709_p10), 1039360  }
  0x2b   : > { %s2123_s7 = sshll.u32 (!%p709_p10), %s715_s24, 4  ;;  %s717_s8 = scalar_lea.vmem (!%p709_p10), [#allocation3], %s2122_s6  ;;  %946 = vmatprep.mubr.f32.mxu1 (!%p709_p10), %v2554_v14  ;;  %1377 = vmatprep.mubr.f32.mxu0 (!%p709_p10), %v2554_v14  ;;  %v824_v21 = vshrl.u32 (!%p709_p10), %v823_v19, 7  ;;  %v822_v26 = vsel (!%p709_p10), %vm816_vm0, 1, %v2553_v13  ;;  %v1042_v33 = vsel (!%p709_p10), %vm817_vm2, 1, %v2553_v13  ;;  %vm1406_vm5 = vcmask (!%p709_p10), 900096  }
  0x2c   : > { %v2650_v4 = vld [vmem:[%s717_s8 + $0x8] sm:$0xff] (!%p709_p10)  ;;  %s724_s9 = scalar_lea.vmem (!%p709_p10), [#allocation4], %s2123_s7  ;;  %v2653_v8 = vld [vmem:[%s717_s8 + $0x18] sm:$0xff] (!%p709_p10)  ;;  %s2552_s11 = smov (!%p709_p10), 127   ;;  %v2656_v10 = vld [vmem:[%s717_s8] sm:$0xff] (!%p709_p10)  ;;  %vm875_vm9 = vcmask (!%p709_p10), 130048  }
  0x2d   : > { %v811_v5 = vld [vmem:[%s724_s9] sm:$0xff] (!%p709_p10)  ;;  %v812_v6 = vld [vmem:[%s724_s9 + $0x8] sm:$0xff] (!%p709_p10)  ;;  %v2195_v15 = vpack.c.bf16 (!%p709_p10), %v2653_v8, %v2650_v4  ;;  %s2555_s18 = smov (!%p709_p10), 110   ;;  %s2556_s12 = smov (!%p709_p10), 126   ;;  %v829_v27 = vsub.s32 (!%p709_p10), 1, %v824_v21  ;;  %v825_v39 = vsub.s32 (!%p709_p10), 0, %v824_v21 }
  0x2e   : > { %v2367_v7 = vpack.i.bf16 (!%p709_p10), %v811_v5, %v2650_v4  ;;  %v2372_v9 = vpack.i.bf16 (!%p709_p10), %v812_v6, %v2653_v8  ;;  %v2658_v11 = vld [vmem:[%s717_s8 + $0x10] sm:$0xff] (!%p709_p10)  ;;  %s2557_s13 = smov (!%p709_p10), 96   ;;  %s2558_s14 = smov (!%p709_p10), 112   ;;  %vm1065_vm11 = vcmask (!%p709_p10), 1031168   ;;  %vm1521_vm15 = vcmask (!%p709_p10), 785408  }
  0x2f   : > { %v2382_v12 = vpack.i.bf16 (!%p709_p10), %v2658_v11, %v2656_v10  ;;  %v2198_v16 = vpack.c.bf16 (!%p709_p10), %v2658_v11, %v2656_v10  ;;  %s2559_s15 = smov (!%p709_p10), 95   ;;  %s2560_s16 = smov (!%p709_p10), 94   ;;  %v830_v34 = vrot.slane (!%p709_p10), %v822_v26, %v829_v27  ;;  %v1050_v43 = vrot.slane (!%p709_p10), %v1042_v33, %v829_v27 }
  0x30   : > { %2368 = vrot.lane.b32.xlu1 (!%p709_p10), %v2367_v7, %s2551_s10  ;;  %2358 = vrot.lane.b32.xlu0 (!%p709_p10), %v2367_v7, %s2552_s11  ;;  %p783_p11 = scmp.lt.s32.totalorder (!%p709_p10), %s2525_s20, 1  ;;  %v826_v48 = vrot.slane (!%p709_p10), %v822_v26, %v825_v39  ;;  %v1046_v53 = vrot.slane (!%p709_p10), %v1042_v33, %v825_v39  ;;  %vm1180_vm0 = vcmask (!%p709_p10), 916480   ;;  %vm1747_vm2 = vcmask (!%p709_p10), 769024  }
  0x31   : > { %vm832_vm4 = vcmp.eq.s32.totalorder %v830_v34, 1  ;;  %vm1052_vm6 = vcmp.eq.s32.totalorder %v1050_v43, 1 }
  0x32   : > { %s2870_s20 = smov (!%p783_p11, %s2525_s20), 1  ;;  %vm2700_vm7 = vmpackc.low %vm832_vm4, %vm832_vm4  ;;  %vm831_vm8 = vcmp.eq.s32.totalorder %v826_v48, 1  ;;  %vm1051_vm12 = vcmp.eq.s32.totalorder %v1046_v53, 1 }
  0x33   : > { %s2189_s17 = sshll.u32 %s2870_s20, 4  ;;  %s2274_s24 = smul.u32 144, %s2870_s20  ;;  %vm2709_vm10 = vmpackc.low %vm1052_vm6, %vm1052_vm6 }
  0x34   : > { %2373 = vrot.lane.b32.xlu1 %v2372_v9, %s2551_s10  ;;  %2363 = vrot.lane.b32.xlu0 %v2372_v9, %s2552_s11  ;;  %s792_s28 = scalar_lea.vmem %s2850_s4, %s2189_s17  ;;  %vm2720_vm13 = vmpackc.low %vm831_vm8, %vm831_vm8  ;;  %s2190_s9 = sshll.u32 %s2870_s20, 5 }
  0x35   : > { %v1850_v17 = vld [vmem:[%s792_s28] sm:$0xff]  ;;  %v1851_v18 = vld [vmem:[%s792_s28 + $0x8] sm:$0xff]  ;;  %s2694_s8 = scalar_lea.vmem %s2849_s3, %s2274_s24  ;;  %vm2732_vm14 = vmpackc.low %vm1051_vm12, %vm1051_vm12 }
  0x36   : > { %v2129_v3 = vld [vmem:[%s2694_s8 + $0x10] sm:$0xff]  ;;  %v2155_v5 = vld [vmem:[%s2694_s8 + $0x40] sm:$0xff]  ;;  %v2130_v4 = vld [vmem:[%s2694_s8 + $0x18] sm:$0xff] }
  0x37   : > { %v837_v10 = vld [vmem:[%s2694_s8] sm:$0xff]  ;;  %v2159_v11 = vld [vmem:[%s2694_s8 + $0x50] sm:$0xff] }
  0x38   : > { %2383 = vrot.lane.b32.xlu1 %v2382_v12, %s2551_s10  ;;  %2378 = vrot.lane.b32.xlu0 %v2382_v12, %s2552_s11 }
  0x3c   : > { %2393 = vrot.lane.b32.xlu1 %v2372_v9, %s2555_s18  ;;  %2388 = vrot.lane.b32.xlu0 %v2367_v7, %s2555_s18 }
  0x40   : > { %2403 = vrot.lane.b32.xlu1 %v2367_v7, %s2556_s12  ;;  %2398 = vrot.lane.b32.xlu0 %v2382_v12, %s2555_s18  ;;  %s801_s18 = scalar_lea.vmem %s2851_s5, %s2190_s9 }
  0x44   : > { %2413 = vrot.lane.b32.xlu1 %v2367_v7, %s2557_s13  ;;  %2408 = vrot.lane.b32.xlu0 %v2372_v9, %s2556_s12 }
  0x48   : > { %2423 = vrot.lane.b32.xlu1 %v2382_v12, %s2556_s12  ;;  %2418 = vrot.lane.b32.xlu0 %v2372_v9, %s2557_s13 }
  0x4c   : > { %2433 = vrot.lane.b32.xlu1 %v2367_v7, %s2558_s14  ;;  %2428 = vrot.lane.b32.xlu0 %v2382_v12, %s2557_s13 }
  0x50   : > { %2443 = vrot.lane.b32.xlu1 %v2367_v7, %s2559_s15  ;;  %2438 = vrot.lane.b32.xlu0 %v2372_v9, %s2558_s14 }
  0x54   : > { %2453 = vrot.lane.b32.xlu1 %v2382_v12, %s2558_s14  ;;  %2448 = vrot.lane.b32.xlu0 %v2372_v9, %s2559_s15 }
  0x58   : > { %2463 = vrot.lane.b32.xlu1 %v2367_v7, %s2560_s16  ;;  %2458 = vrot.lane.b32.xlu0 %v2382_v12, %s2559_s15 }
  0x5c   : > { %2473 = vrot.lane.b32.xlu1 %v2382_v12, %s2560_s16  ;;  %2468 = vrot.lane.b32.xlu0 %v2372_v9, %s2560_s16  ;;  %v2180_v9 = vld [vmem:[%s2694_s8 + $0x88] sm:$0xff] }
  0x60   : > { %1854 = vperm.xlu0 %2477, %v1850_v17   ;;  %1859 = vperm.xlu1 %2478, %v1851_v18  }
  0xa2   : > { %v2369_v22 = vpop.permute.xlu1 %2368  ;;  %v2359_v23 = vpop.permute.xlu0 %2358 }
  0xa3   : > { %v2371_v24 = vunpack.i.h.bf16 %v2369_v22  ;;  %v2370_v25 = vunpack.i.l.bf16 %v2369_v22  ;;  %v2361_v28 = vunpack.i.h.bf16 %v2359_v23  ;;  %v2360_v29 = vunpack.i.l.bf16 %v2359_v23 }
  0xa5   : > { %v1300_v32 = vsel %vm1298_vm1, %v2370_v25, %v2371_v24  ;;  %v868_v40 = vsel %vm866_vm3, %v2360_v29, %v2361_v28 }
  0xa6   : > { %v2374_v30 = vpop.permute.xlu1 %2373  ;;  %v2364_v31 = vpop.permute.xlu0 %2363 }
  0xa7   : > { %v2376_v35 = vunpack.i.h.bf16 %v2374_v30  ;;  %v2375_v36 = vunpack.i.l.bf16 %v2374_v30  ;;  %v2366_v37 = vunpack.i.h.bf16 %v2364_v31  ;;  %v2365_v38 = vunpack.i.l.bf16 %v2364_v31 }
  0xa9   : > { %v870_v41 = vsel %vm866_vm3, %v2365_v38, %v2366_v37  ;;  %v1302_v42 = vsel %vm1298_vm1, %v2375_v36, %v2376_v35 }
  0xaa   : > { %v2384_v44 = vpop.permute.xlu1 %2383  ;;  %v2379_v45 = vpop.permute.xlu0 %2378  ;;  %v2191_v46 = vpack.c.bf16 %v870_v41, %v868_v40  ;;  %v2684_v47 = vpack.c.bf16 %v1302_v42, %v1300_v32  ;;  %v838_v40 = vld [vmem:[%s2694_s8 + $0x8] sm:$0xff]  ;;  %v2160_v41 = vld [vmem:[%s2694_s8 + $0x58] sm:$0xff] }
  0xab   : > { %v2386_v49 = vunpack.i.h.bf16 %v2384_v44  ;;  %v2385_v50 = vunpack.i.l.bf16 %v2384_v44  ;;  %v2381_v51 = vunpack.i.h.bf16 %v2379_v45  ;;  %v2380_v52 = vunpack.i.l.bf16 %v2379_v45 }
  0xac   : > { %2192 = vmatprep.subr.bf16.mxu1 %v2191_v46  ;;  %2214 = vmatprep.subr.bf16.mxu0 %v2684_v47 }
  0xad   : > { %v867_v54 = vsel %vm866_vm3, %v2380_v52, %v2360_v29  ;;  %v869_v55 = vsel %vm866_vm3, %v2381_v51, %v2365_v38  ;;  %v1299_v56 = vsel %vm1298_vm1, %v2385_v50, %v2370_v25  ;;  %v1301_v57 = vsel %vm1298_vm1, %v2386_v49, %v2375_v36 }
  0xae   : > { %v2394_v58 = vpop.permute.xlu1 %2393  ;;  %v2389_v59 = vpop.permute.xlu0 %2388  ;;  %v2193_v60 = vpack.c.bf16 %v869_v55, %v867_v54  ;;  %v2696_v61 = vpack.c.bf16 %v1301_v57, %v1299_v56  ;;  %v2139_v54 = vld [vmem:[%s2694_s8 + $0x20] sm:$0xff]  ;;  %vm1639_vm1 = vcmask 777216  }
  0xaf   : > { %v2396_v63 = vunpack.i.h.bf16 %v2394_v58  ;;  %v2395_v0 = vunpack.i.l.bf16 %v2394_v58  ;;  %v2391_v1 = vunpack.i.h.bf16 %v2389_v59  ;;  %v2390_v2 = vunpack.i.l.bf16 %v2389_v59 }
  0xb0   : > { %2194 = vmatpush1.bf16.msra.mxu1 %v2193_v60  ;;  %2216 = vmatpush1.bf16.msra.mxu0 %v2696_v61 }
  0xb1   : > { %v1410_v6 = vsel %vm1406_vm5, %v2395_v0, %v2396_v63  ;;  %v1408_v7 = vsel %vm1406_vm5, %v2390_v2, %v2391_v1  ;;  %2197 = vmatprep.subr.msk.bf16.mxu1 %vm2700_vm7, %v2195_v15 }
  0xb2   : > { %v2217_v12 = vpack.c.bf16 %v1410_v6, %v1408_v7  ;;  %v2404_v13 = vpop.permute.xlu1 %2403  ;;  %v2399_v17 = vpop.permute.xlu0 %2398 }
  0xb3   : > { %v2406_v19 = vunpack.i.h.bf16 %v2404_v13  ;;  %v2405_v20 = vunpack.i.l.bf16 %v2404_v13  ;;  %v2401_v21 = vunpack.i.h.bf16 %v2399_v17  ;;  %v2400_v22 = vunpack.i.l.bf16 %v2399_v17  ;;  %2131 = vmatmul.mubr.msk.f32.vlgmr.msra.gmra.mrb[0].mxu1 %vm875_vm9, %v2129_v3  ;;  %2157 = vmatmul.mubr.msk.f32.vlgmr.msra.gmra.mrb[0].mxu0 %vm875_vm9, %v2155_v5  ;;  %v2140_v3 = vld [vmem:[%s2694_s8 + $0x28] sm:$0xff]  ;;  %v2167_v5 = vld [vmem:[%s2694_s8 + $0x60] sm:$0xff] }
  0xb4   : > { %2219 = vmatprep.subr.msk.bf16.mxu0 %vm2709_vm10, %v2217_v12  ;;  %952 = vmatprep.mubr.f32.mxu1 %v2554_v14 }
  0xb5   : > { %v1409_v8 = vsel %vm1406_vm5, %v2401_v21, %v2395_v0  ;;  %v1407_v15 = vsel %vm1406_vm5, %v2400_v22, %v2390_v2  ;;  %2200 = vmatpush1.bf16.msk.msra.mxu1 %vm2720_vm13, %v2198_v16  ;;  %1492 = vmatprep.mubr.f32.mxu0 %v2554_v14  ;;  %v1067_v24 = vsel %vm1065_vm11, %v2405_v20, %v2406_v19 }
  0xb6   : > { %v2220_v25 = vpack.c.bf16 %v1409_v8, %v1407_v15  ;;  %v2414_v26 = vpop.permute.xlu1 %2413  ;;  %v2409_v27 = vpop.permute.xlu0 %2408 }
  0xb7   : > { %v2416_v28 = vunpack.i.h.bf16 %v2414_v26  ;;  %v2415_v29 = vunpack.i.l.bf16 %v2414_v26  ;;  %v2411_v30 = vunpack.i.h.bf16 %v2409_v27  ;;  %v2410_v31 = vunpack.i.l.bf16 %v2409_v27  ;;  %2132 = vmatmul.mubr.msk.f32.gmra.mrb[2].mxu1 %vm875_vm9, %v2130_v4  ;;  %v2168_v4 = vld [vmem:[%s2694_s8 + $0x68] sm:$0xff] }
  0xb8   : > { %2222 = vmatpush1.bf16.msk.msra.mxu0 %vm2732_vm14, %v2220_v25  ;;  %1029 = vmatprep.mubr.f32.mxu1 %v2554_v14 }
  0xb9   : > { %v1069_v16 = vsel %vm1065_vm11, %v2410_v31, %v2411_v30  ;;  %v1523_v32 = vsel %vm1521_vm15, %v2415_v29, %v2416_v28 }
  0xba   : > { %v2201_v33 = vpack.c.bf16 %v1069_v16, %v1067_v24  ;;  %v2424_v34 = vpop.permute.xlu1 %2423  ;;  %v2419_v35 = vpop.permute.xlu0 %2418 }
  0xbb   : > { %v2426_v36 = vunpack.i.h.bf16 %v2424_v34  ;;  %v2425_v37 = vunpack.i.l.bf16 %v2424_v34  ;;  %v2421_v38 = vunpack.i.h.bf16 %v2419_v35  ;;  %v2420_v39 = vunpack.i.l.bf16 %v2419_v35  ;;  %2137 = vmatmul.mubr.msk.f32.vlgmr.msra.gmra.mrb[0].mxu1 %vm875_vm9, %v837_v10  ;;  %2165 = vmatmul.mubr.msk.f32.vlgmr.msra.gmra.mrb[0].mxu0 %vm875_vm9, %v2159_v11  ;;  %v2147_v10 = vld [vmem:[%s2694_s8 + $0x30] sm:$0xff] }
  0xbc   : > { %2203 = vmatprep.subr.msk.bf16.mxu1 %vm2709_vm10, %v2201_v33  ;;  %1035 = vmatprep.mubr.f32.mxu1 %v2554_v14 }
  0xbd   : > { %v1066_v42 = vsel %vm1065_vm11, %v2425_v37, %v2405_v20  ;;  %v1068_v43 = vsel %vm1065_vm11, %v2426_v36, %v2410_v31  ;;  %v1525_v44 = vsel %vm1521_vm15, %v2420_v39, %v2421_v38  ;;  %1498 = vmatprep.mubr.f32.mxu0 %v2554_v14 }
  0xbe   : > { %v2204_v45 = vpack.c.bf16 %v1068_v43, %v1066_v42  ;;  %v2223_v46 = vpack.c.bf16 %v1525_v44, %v1523_v32  ;;  %v2434_v48 = vpop.permute.xlu1 %2433  ;;  %v2429_v49 = vpop.permute.xlu0 %2428 }
  0xbf   : > { %v2436_v50 = vunpack.i.h.bf16 %v2434_v48  ;;  %v2435_v51 = vunpack.i.l.bf16 %v2434_v48  ;;  %v2431_v52 = vunpack.i.h.bf16 %v2429_v49  ;;  %v2430_v53 = vunpack.i.l.bf16 %v2429_v49  ;;  %2138 = vmatmul.mubr.msk.f32.gmra.mrb[2].mxu1 %vm875_vm9, %v838_v40  ;;  %2166 = vmatmul.mubr.msk.f32.gmra.mrb[2].mxu0 %vm875_vm9, %v2160_v41  ;;  %v2175_v40 = vld [vmem:[%s2694_s8 + $0x70] sm:$0xff] }
  0xc0   : > { %2206 = vmatpush1.bf16.msk.msra.mxu1 %vm2732_vm14, %v2204_v45  ;;  %2225 = vmatprep.subr.msk.bf16.mxu0 %vm2700_vm7, %v2223_v46  ;;  %v2156_v45 = vld [vmem:[%s2694_s8 + $0x48] sm:$0xff]  ;;  %v2179_v46 = vld [vmem:[%s2694_s8 + $0x80] sm:$0xff] }
  0xc1   : > { %v1522_v55 = vsel %vm1521_vm15, %v2430_v53, %v2415_v29  ;;  %v1524_v56 = vsel %vm1521_vm15, %v2431_v52, %v2420_v39  ;;  %1151 = vmatprep.mubr.f32.mxu1 %v2554_v14  ;;  %1607 = vmatprep.mubr.f32.mxu0 %v2554_v14  ;;  %v1182_v57 = vsel %vm1180_vm0, %v2435_v51, %v2436_v50  ;;  %v2148_v39 = vld [vmem:[%s2694_s8 + $0x38] sm:$0xff] }
  0xc2   : > { %v2226_v58 = vpack.c.bf16 %v1524_v56, %v1522_v55  ;;  %v2444_v59 = vpop.permute.xlu1 %2443  ;;  %v2439_v60 = vpop.permute.xlu0 %2438 }
  0xc3   : > { %v2446_v63 = vunpack.i.h.bf16 %v2444_v59  ;;  %v2445_v0 = vunpack.i.l.bf16 %v2444_v59  ;;  %v2441_v1 = vunpack.i.h.bf16 %v2439_v60  ;;  %v2440_v2 = vunpack.i.l.bf16 %v2439_v60  ;;  %2145 = vmatmul.mubr.msk.f32.vlgmr.msra.gmra.mrb[0].mxu1 %vm875_vm9, %v2139_v54 }
  0xc4   : > { %2228 = vmatpush1.bf16.msk.msra.mxu0 %vm2720_vm13, %v2226_v58  ;;  %1157 = vmatprep.mubr.f32.mxu1 %v2554_v14 }
  0xc5   : > { %v1184_v6 = vsel %vm1180_vm0, %v2440_v2, %v2441_v1  ;;  %v1641_v17 = vsel %vm1639_vm1, %v2445_v0, %v2446_v63 }
  0xc6   : > { %v2207_v7 = vpack.c.bf16 %v1184_v6, %v1182_v57  ;;  %v2454_v12 = vpop.permute.xlu1 %2453  ;;  %v2449_v13 = vpop.permute.xlu0 %2448 }
  0xc7   : > { %v2456_v19 = vunpack.i.h.bf16 %v2454_v12  ;;  %v2455_v20 = vunpack.i.l.bf16 %v2454_v12  ;;  %v2451_v21 = vunpack.i.h.bf16 %v2449_v13  ;;  %v2450_v22 = vunpack.i.l.bf16 %v2449_v13  ;;  %2146 = vmatmul.mubr.msk.f32.gmra.mrb[2].mxu1 %vm875_vm9, %v2140_v3  ;;  %2173 = vmatmul.mubr.msk.f32.vlgmr.msra.gmra.mrb[0].mxu0 %vm875_vm9, %v2167_v5 }
  0xc8   : > { %2209 = vmatprep.subr.msk.bf16.mxu1 %vm2700_vm7, %v2207_v7  ;;  %1266 = vmatprep.mubr.f32.mxu1 %v2554_v14 }
  0xc9   : > { %v1181_v8 = vsel %vm1180_vm0, %v2455_v20, %v2435_v51  ;;  %v1183_v15 = vsel %vm1180_vm0, %v2456_v19, %v2440_v2  ;;  %v1643_v24 = vsel %vm1639_vm1, %v2450_v22, %v2451_v21  ;;  %1613 = vmatprep.mubr.f32.mxu0 %v2554_v14 }
  0xca   : > { %v2210_v25 = vpack.c.bf16 %v1183_v15, %v1181_v8  ;;  %v2464_v26 = vpop.permute.xlu1 %2463  ;;  %v2459_v27 = vpop.permute.xlu0 %2458  ;;  %v2229_v28 = vpack.c.bf16 %v1643_v24, %v1641_v17 }
  0xcb   : > { %v2466_v29 = vunpack.i.h.bf16 %v2464_v26  ;;  %v2465_v62 = vunpack.i.l.bf16 %v2464_v26  ;;  %v2461_v30 = vunpack.i.h.bf16 %v2459_v27  ;;  %v2460_v31 = vunpack.i.l.bf16 %v2459_v27  ;;  %2174 = vmatmul.mubr.msk.f32.gmra.mrb[2].mxu0 %vm875_vm9, %v2168_v4 }
  0xcc   : > { %2212 = vmatpush1.bf16.msk.msra.mxu1 %vm2720_vm13, %v2210_v25  ;;  %2230 = vmatprep.subr.bf16.mxu0 %v2229_v28 }
  0xcd   : > { %v1640_v11 = vsel %vm1639_vm1, %v2460_v31, %v2445_v0  ;;  %v1642_v16 = vsel %vm1639_vm1, %v2461_v30, %v2450_v22  ;;  %2239 = vmatprep.subr.bf16.mxu1 %v2684_v47  ;;  %1718 = vmatprep.mubr.f32.mxu0 %v2554_v14  ;;  %v1749_v32 = vsel %vm1747_vm2, %v2465_v62, %v2466_v29 }
  0xce   : > { %v2231_v33 = vpack.c.bf16 %v1642_v16, %v1640_v11  ;;  %v2474_v34 = vpop.permute.xlu1 %2473  ;;  %v2469_v35 = vpop.permute.xlu0 %2468 }
  0xcf   : > { %v2476_v36 = vunpack.i.h.bf16 %v2474_v34  ;;  %v2475_v18 = vunpack.i.l.bf16 %v2474_v34  ;;  %v2471_v37 = vunpack.i.h.bf16 %v2469_v35  ;;  %v2470_v38 = vunpack.i.l.bf16 %v2469_v35  ;;  %2153 = vmatmul.mubr.msk.f32.vlgmr.msra.gmra.mrb[0].mxu1 %vm875_vm9, %v2147_v10 }
  0xd0   : > { %2240 = vmatpush1.bf16.msra.mxu1 %v2696_v61  ;;  %2232 = vmatpush1.bf16.msra.mxu0 %v2231_v33  ;;  %v2176_v61 = vld [vmem:[%s2694_s8 + $0x78] sm:$0xff] }
  0xd1   : > { %v1748_v47 = vsel %vm1747_vm2, %v2475_v18, %v2465_v62  ;;  %v1750_v41 = vsel %vm1747_vm2, %v2476_v36, %v2470_v38  ;;  %v1751_v42 = vsel %vm1747_vm2, %v2470_v38, %v2471_v37  ;;  %1272 = vmatprep.mubr.f32.mxu1 %v2554_v14 }
  0xd2   : > { %v2233_v43 = vpack.c.bf16 %v1751_v42, %v1749_v32  ;;  %v2236_v44 = vpack.c.bf16 %v1750_v41, %v1748_v47 }
  0xd3   : > { %2154 = vmatmul.mubr.msk.f32.gmra.mrb[2].mxu1 %vm875_vm9, %v2148_v39  ;;  %2177 = vmatmul.mubr.msk.f32.vlgmr.msra.gmra.mrb[0].mxu0 %vm875_vm9, %v2175_v40 }
  0xd4   : > { %2235 = vmatprep.subr.msk.bf16.mxu0 %vm2709_vm10, %v2233_v43  ;;  %1724 = vmatprep.mubr.f32.mxu0 %v2554_v14 }
  0xd5   : > { %2238 = vmatpush1.bf16.msk.msra.mxu0 %vm2732_vm14, %v2236_v44  ;;  %1383 = vmatprep.mubr.f32.mxu1 %v2554_v14 }
  0xd7   : > { %2178 = vmatmul.mubr.msk.f32.gmra.mrb[2].mxu0 %vm875_vm9, %v2176_v61 }
  0xd8   : > { %1833 = vmatprep.mubr.f32.mxu0 %v2554_v14 }
  0xdb   : > { %2158 = vmatmul.mubr.msk.f32.vlgmr.msra.gmra.mrb[2].mxu1 %vm875_vm9, %v2156_v45  ;;  %2185 = vmatmul.mubr.msk.f32.vlgmr.msra.gmra.mrb[0].mxu0 %vm875_vm9, %v2179_v46 }
  0xdc   : > { %1839 = vmatprep.mubr.f32.mxu0 %v2554_v14 }
  0xdf   : > { %2186 = vmatmul.mubr.msk.f32.gmra.mrb[2].mxu0 %vm875_vm9, %v2180_v9  ;;  %v1855_v49 = vpop.permute.xlu0 %1854  ;;  %v1860_v58 = vpop.permute.xlu1 %1859 }
 0x1a2   : > { %v1268_v48 = vpop.f32.mrb[0].mxu1 }
 0x1a3   : > { %v1270_v23 = vpop.f32.mrb[1].mxu1 }
 0x1ae   : > { %v1385_v50 = vpop.f32.mrb[2].mxu1  ;;  %v1835_v51 = vpop.f32.mrb[0].mxu0 }
 0x1af   : > { %v2241_v52 = vadd.f32 %v1835_v51, %v1268_v48  ;;  %v1387_v53 = vpop.f32.mrb[3].mxu1  ;;  %v1837_v54 = vpop.f32.mrb[1].mxu0 }
 0x1b0   : > { %v2242_v55 = vadd.f32 %v1837_v54, %v1270_v23 }
 0x1b1   : > { %v1862_v56 = vadd.f32 %v2241_v52, %v1855_v49 }
 0x1b2   : > { %v1863_v57 = vadd.f32 %v2242_v55, %v1855_v49  ;;  %v1841_v14 = vpop.f32.mrb[2].mxu0 }
 0x1b3   : > { %1866 = vst [vmem:[%s801_s18] sm:$0xff] %v1862_v56  ;;  %v2243_v59 = vadd.f32 %v1841_v14, %v1385_v50  ;;  %v1843_v60 = vpop.f32.mrb[3].mxu0 }
 0x1b4   : > { %1867 = vst [vmem:[%s801_s18 + $0x8] sm:$0xff] %v1863_v57  ;;  %v2244_v63 = vadd.f32 %v1843_v60, %v1387_v53 }
 0x1b5   : > { %v1864_v0 = vadd.f32 %v2243_v59, %v1860_v58 }
 0x1b6   : > { %v1865_v1 = vadd.f32 %v2244_v63, %v1860_v58 }
 0x1b7   : > { %1868 = vst [vmem:[%s801_s18 + $0x10] sm:$0xff] %v1864_v0 }
 0x1b8   : > { %1869 = vst [vmem:[%s801_s18 + $0x18] sm:$0xff] %v1865_v1 }
 0x1b9 PF: > { %s15_s22 = sadd.s32 1, %s2533_s22   ;;  %s2861_s18 = smov %s2521_s19 }
 0x1ba   : > { %p12_p12 = scmp.ge.s32.totalorder %s15_s22, 4   ;;  %s2862_s19 = smov %s2630_s27 }
 0x1bb   : > { %s2863_s20 = smov %s2529_s21  ;;  %s2864_s21 = smov %s2866_s23 }
 0x1bc   :  { %14 = sbr.rel (!%p12_p12) target bundleno = 3 (0x3), region = 266 }

</bundles_post_ra>
